<compile_context>
chip_gen: v5e
topology: v5e:2x2
jax: 0.10.0
libtpu: 0.0.40
codegen_flags: <defaults>
</compile_context>

<pallas_src>
import numpy as np
import jax
import jax.numpy as jnp
from jax.experimental import pallas as pl
from jax.experimental.pallas import tpu as pltpu


def semgcn_kernel(a_off_t_ref, a_diag_ref, x_ref, w0_ref, w1_ref, b_ref, o_ref):
    # a_off_t_ref: (J, J)      f32  transposed off-diag weights: a_off_t[k, j] = A_off[j, k]
    # a_diag_ref : (J, Fout)   f32  diag(A) pre-broadcast, lane-major
    # x_ref      : (TB, J, Fin)     input dtype (f32 or bf16)
    # w0_ref,w1_ref: (Fin, Fout)    input dtype
    # b_ref      : (1, Fout)   f32
    # o_ref      : (TB, J, Fout)    input dtype
    TB, J, Fin = x_ref.shape
    Fout = w0_ref.shape[1]
    dt = x_ref.dtype

    x = x_ref[...]
    x2 = x.reshape(TB * J, Fin)                      # free view (J % 8 == 0)

    # Self term: (A*I) is diagonal -> project with W0 then per-row VPU scale.
    h0 = jnp.dot(x2, w0_ref[...], preferred_element_type=jnp.float32)
    out = a_diag_ref[...] * h0.reshape(TB, J, Fout)  # (J,Fout) broadcasts over TB

    aggregate_first = (Fin < Fout) and (Fin % 8 == 0)
    if aggregate_first:
        # (A_off @ x) @ W1 : aggregate on the narrower Fin side first.
        x_t = jnp.swapaxes(x, 1, 2).reshape(TB * Fin, J)          # (TB*Fin, J)
        xa = jnp.dot(x_t, a_off_t_ref[...].astype(dt),
                     preferred_element_type=jnp.float32)          # (TB*Fin, J)
        xa = jnp.swapaxes(xa.reshape(TB, Fin, J), 1, 2)           # (TB, J, Fin)
        xa = xa.reshape(TB * J, Fin).astype(dt)
        off = jnp.dot(xa, w1_ref[...], preferred_element_type=jnp.float32)
        out = out + off.reshape(TB, J, Fout)
    elif Fout % 8 == 0:
        # (x @ W1) then one wide (TB*Fout, J) @ (J, J) aggregation matmul.
        h1 = jnp.dot(x2, w1_ref[...], preferred_element_type=jnp.float32)
        h1_t = jnp.swapaxes(h1.reshape(TB, J, Fout), 1, 2)        # (TB, Fout, J)
        off = jnp.dot(h1_t.reshape(TB * Fout, J), a_off_t_ref[...],
                      preferred_element_type=jnp.float32)         # (TB*Fout, J)
        out = out + jnp.swapaxes(off.reshape(TB, Fout, J), 1, 2)  # (TB, J, Fout)
    else:
        # Ragged Fout (e.g. a final 3-channel layer): batched-matmul fallback.
        h1 = jnp.dot(x2, w1_ref[...], preferred_element_type=jnp.float32)
        h1 = h1.reshape(TB, J, Fout)
        a_off = jnp.swapaxes(a_off_t_ref[...], 0, 1)
        a_off_b = jnp.broadcast_to(a_off, (TB, J, J))
        out = out + jnp.einsum("bjk,bkf->bjf", a_off_b, h1,
                               preferred_element_type=jnp.float32)

    out = out + b_ref[...]
    o_ref[...] = out.astype(o_ref.dtype)


def _pick_tb(B, Jp, Fin, Fout, itemsize, vmem_budget_bytes, tb_cap):
    """Largest batch block that (a) fits the VMEM budget, (b) is a divisor of B
    (no pad/slice HBM round trips) when a reasonable divisor exists, and
    (c) leaves >= 2 grid steps so v7x's two TensorCores both get work."""
    per_b = Jp * (2 * Fin * itemsize + 2 * Fout * itemsize
                  + 6 * max(Fin, Fout) * 4)   # double-buffered x/out blocks + f32 temps
    tb_vmem = max(1, vmem_budget_bytes // max(per_b, 1))
    limit = max(1, min(tb_cap, tb_vmem, B))
    if B > 1:
        limit = max(1, min(limit, -(-B // 2)))
    divisors = [d for d in range(1, limit + 1) if B % d == 0]
    tb = max(divisors)
    if tb * 4 < limit:            # awkward (prime-ish) B: pad instead of tiny blocks
        tb = limit
    return tb


def semantic_graph_conv(x, adj_logits, w0, w1, bias, *,
                        vmem_budget_bytes=20 * 1024 * 1024, tb_cap=1024):
    """x: (B, J, Fin) -> (B, J, Fout).  adj_logits: (J, J) masked logits."""
    B, J, Fin = x.shape
    Fout = w0.shape[1]
    dt = x.dtype

    # Batch-invariant adjacency softmax, hoisted out of the kernel (f32).
    A = jax.nn.softmax(adj_logits.astype(jnp.float32), axis=1)
    eye = jnp.eye(J, dtype=jnp.float32)
    a_off_t = jnp.transpose(A * (1.0 - eye))                        # [source k, target j]
    a_diag = jnp.broadcast_to(jnp.diagonal(A)[:, None], (J, Fout))  # lane-major diag(A)

    # Sublane-align the joint axis so in-kernel leading-dim reshapes are free views.
    Jp = -(-J // 8) * 8
    if Jp != J:
        x = jnp.pad(x, ((0, 0), (0, Jp - J), (0, 0)))
        a_off_t = jnp.pad(a_off_t, ((0, Jp - J), (0, Jp - J)))
        a_diag = jnp.pad(a_diag, ((0, Jp - J), (0, 0)))

    w0 = w0.astype(dt)
    w1 = w1.astype(dt)
    bias2d = bias.reshape(1, Fout).astype(jnp.float32)

    TB = _pick_tb(B, Jp, Fin, Fout, jnp.dtype(dt).itemsize, vmem_budget_bytes, tb_cap)
    Bp = -(-B // TB) * TB
    if Bp != B:
        x = jnp.pad(x, ((0, Bp - B), (0, 0), (0, 0)))

    grid_spec = pltpu.PrefetchScalarGridSpec(
        num_scalar_prefetch=0,
        grid=(Bp // TB,),
        in_specs=[
            pl.BlockSpec((Jp, Jp), lambda i: (0, 0)),            # A_off^T
            pl.BlockSpec((Jp, Fout), lambda i: (0, 0)),          # diag(A), pre-broadcast
            pl.BlockSpec((TB, Jp, Fin), lambda i: (i, 0, 0)),    # x batch block
            pl.BlockSpec((Fin, Fout), lambda i: (0, 0)),         # W0
            pl.BlockSpec((Fin, Fout), lambda i: (0, 0)),         # W1
            pl.BlockSpec((1, Fout), lambda i: (0, 0)),           # bias
        ],
        out_specs=pl.BlockSpec((TB, Jp, Fout), lambda i: (i, 0, 0)),
    )

    out = pl.pallas_call(
        semgcn_kernel,
        out_shape=jax.ShapeDtypeStruct((Bp, Jp, Fout), dt),
        grid_spec=grid_spec,
        compiler_params=pltpu.CompilerParams(
            dimension_semantics=("parallel",),
            vmem_limit_bytes=32 * 1024 * 1024),
    )(a_off_t, a_diag, x, w0, w1, bias2d)

    if Bp != B or Jp != J:
        out = out[:B, :J, :]
    return out


def build_params(key, in_features, out_features, adj_np):
    """Deterministic parameter init mirroring the PyTorch __init__/_init_param_."""
    J = adj_np.shape[0]
    k_w, k_b, k_x = jax.random.split(key, 3)

    # xavier_uniform_ with gain=1.414 on weight of shape [2, in, out]
    fan_in = in_features * out_features
    fan_out = 2 * out_features
    bound = 1.414 * np.sqrt(6.0 / (fan_in + fan_out))
    weight = jax.random.uniform(k_w, (2, in_features, out_features),
                                dtype=jnp.float32, minval=-bound, maxval=bound)

    stdv = 1.0 / np.sqrt(out_features)
    bias = jax.random.uniform(k_b, (out_features,), dtype=jnp.float32,
                              minval=-stdv, maxval=stdv)

    # adj_sparse_weight initialized to 1 (one per nonzero entry, row-major)
    rows, cols = np.nonzero(adj_np > 1e-8)
    adj_sparse_weight = jnp.ones((rows.shape[0],), dtype=jnp.float32)

    # A_logits = -9e15 everywhere, sparse weights at nonzero positions
    adj_logits = jnp.full((J, J), -9e15, dtype=jnp.float32)
    adj_logits = adj_logits.at[rows, cols].set(adj_sparse_weight)

    return weight, bias, adj_logits, k_x


def reference(x, adj_logits, w0, w1, bias):
    A = jax.nn.softmax(adj_logits.astype(jnp.float32), axis=1)
    eye = jnp.eye(A.shape[0], dtype=jnp.float32)
    h0 = jnp.einsum("bjf,fo->bjo", x, w0)
    h1 = jnp.einsum("bjf,fo->bjo", x, w1)
    out = (jnp.einsum("ij,bjo->bio", A * eye, h0)
           + jnp.einsum("ij,bjo->bio", A * (1.0 - eye), h1))
    return out + bias.reshape(1, 1, -1)


def _ring_adjacency(J):
    adj = np.eye(J, dtype=np.float32)
    for i in range(J):
        adj[i, (i + 1) % J] = 1.0
        adj[i, (i - 1) % J] = 1.0
    return adj


def run_case(B, J, Fin, Fout):
    adj_np = _ring_adjacency(J)
    key = jax.random.PRNGKey(0)
    weight, bias, adj_logits, k_x = build_params(key, Fin, Fout, adj_np)
    w0, w1 = weight[0], weight[1]
    x = jax.random.normal(k_x, (B, J, Fin), dtype=jnp.float32)

    out = jax.block_until_ready(semantic_graph_conv(x, adj_logits, w0, w1, bias))
    ref = reference(x, adj_logits, w0, w1, bias)
    np.testing.assert_allclose(np.asarray(out), np.asarray(ref),
                               rtol=1e-4, atol=1e-4)


if __name__ == "__main__":
    run_case(B=2, J=16, Fin=32, Fout=32)    # project-first path, no padding, 2 grid steps
    run_case(B=4, J=16, Fin=8, Fout=64)     # aggregate-first path (Fin < Fout)
    run_case(B=13, J=12, Fin=16, Fout=16)   # ragged J (pad to 16) + batch-pad fallback
    print("KERNEL_OK")
</pallas_src>

<mosaic_0001>
module attributes {stable_mosaic.version = 11 : i64} {
  func.func @semgcn_kernel(%arg0: i32, %arg1: memref<16x16xf32, #tpu.memory_space<vmem>>, %arg2: memref<16x32xf32, #tpu.memory_space<vmem>>, %arg3: memref<1x16x32xf32, #tpu.memory_space<vmem>>, %arg4: memref<32x32xf32, #tpu.memory_space<vmem>>, %arg5: memref<32x32xf32, #tpu.memory_space<vmem>>, %arg6: memref<1x32xf32, #tpu.memory_space<vmem>>, %arg7: memref<1x16x32xf32, #tpu.memory_space<vmem>>) attributes {dimension_semantics = [#tpu.dimension_semantics<parallel>], iteration_bounds = array<i64: 2>, scalar_prefetch = 0 : i64, scratch_operands = 0 : i64, tpu.core_type = #tpu.core_type<tc>, window_params = [{pipeline_mode = #tpu.pipeline_mode<synchronous>, transform_indices = @transform_0, window_bounds = array<i64: 16, 16>}, {pipeline_mode = #tpu.pipeline_mode<synchronous>, transform_indices = @transform_1, window_bounds = array<i64: 16, 32>}, {transform_indices = @transform_2, window_bounds = array<i64: 1, 16, 32>}, {pipeline_mode = #tpu.pipeline_mode<synchronous>, transform_indices = @transform_3, window_bounds = array<i64: 32, 32>}, {pipeline_mode = #tpu.pipeline_mode<synchronous>, transform_indices = @transform_4, window_bounds = array<i64: 32, 32>}, {pipeline_mode = #tpu.pipeline_mode<synchronous>, transform_indices = @transform_5, window_bounds = array<i64: 1, 32>}, {transform_indices = @transform_6, window_bounds = array<i64: 1, 16, 32>}]} {
    %c0 = arith.constant 0 : index
    %c0_0 = arith.constant 0 : index
    %c0_1 = arith.constant 0 : index
    %0 = vector.load %arg3[%c0, %c0_0, %c0_1] : memref<1x16x32xf32, #tpu.memory_space<vmem>>, vector<1x16x32xf32>
    %1 = vector.shape_cast %0 : vector<1x16x32xf32> to vector<16x32xf32>
    %c0_2 = arith.constant 0 : index
    %c0_3 = arith.constant 0 : index
    %2 = vector.load %arg4[%c0_2, %c0_3] : memref<32x32xf32, #tpu.memory_space<vmem>>, vector<32x32xf32>
    %cst = arith.constant dense<0.000000e+00> : vector<16x32xf32>
    %3 = tpu.matmul %1, %2, %cst {dimension_numbers = #tpu.dot_dimension_numbers<[1], [0], [0], [1], [0, 0, 1, 1], [], []>} : vector<16x32xf32>, vector<32x32xf32>, vector<16x32xf32> -> vector<16x32xf32>
    %c0_4 = arith.constant 0 : index
    %c0_5 = arith.constant 0 : index
    %4 = vector.load %arg2[%c0_4, %c0_5] : memref<16x32xf32, #tpu.memory_space<vmem>>, vector<16x32xf32>
    %5 = vector.shape_cast %3 : vector<16x32xf32> to vector<1x16x32xf32>
    %6 = vector.shape_cast %4 : vector<16x32xf32> to vector<1x16x32xf32>
    %7 = arith.mulf %6, %5 : vector<1x16x32xf32>
    %c0_6 = arith.constant 0 : index
    %c0_7 = arith.constant 0 : index
    %8 = vector.load %arg5[%c0_6, %c0_7] : memref<32x32xf32, #tpu.memory_space<vmem>>, vector<32x32xf32>
    %cst_8 = arith.constant dense<0.000000e+00> : vector<16x32xf32>
    %9 = tpu.matmul %1, %8, %cst_8 {dimension_numbers = #tpu.dot_dimension_numbers<[1], [0], [0], [1], [0, 0, 1, 1], [], []>} : vector<16x32xf32>, vector<32x32xf32>, vector<16x32xf32> -> vector<16x32xf32>
    %10 = vector.shape_cast %9 : vector<16x32xf32> to vector<1x16x32xf32>
    %11 = tpu.transpose %10, [0, 2, 1] : vector<1x16x32xf32> -> vector<1x32x16xf32>
    %12 = vector.shape_cast %11 : vector<1x32x16xf32> to vector<32x16xf32>
    %c0_9 = arith.constant 0 : index
    %c0_10 = arith.constant 0 : index
    %13 = vector.load %arg1[%c0_9, %c0_10] : memref<16x16xf32, #tpu.memory_space<vmem>>, vector<16x16xf32>
    %cst_11 = arith.constant dense<0.000000e+00> : vector<32x16xf32>
    %14 = tpu.matmul %12, %13, %cst_11 {dimension_numbers = #tpu.dot_dimension_numbers<[1], [0], [0], [1], [0, 0, 1, 1], [], []>} : vector<32x16xf32>, vector<16x16xf32>, vector<32x16xf32> -> vector<32x16xf32>
    %15 = vector.shape_cast %14 : vector<32x16xf32> to vector<1x32x16xf32>
    %16 = tpu.transpose %15, [0, 2, 1] : vector<1x32x16xf32> -> vector<1x16x32xf32>
    %17 = arith.addf %7, %16 : vector<1x16x32xf32>
    %c0_12 = arith.constant 0 : index
    %c0_13 = arith.constant 0 : index
    %18 = vector.load %arg6[%c0_12, %c0_13] : memref<1x32xf32, #tpu.memory_space<vmem>>, vector<1x32xf32>
    %19 = vector.shape_cast %18 : vector<1x32xf32> to vector<1x1x32xf32>
    %20 = vector.broadcast %19 : vector<1x1x32xf32> to vector<1x16x32xf32>
    %21 = arith.addf %17, %20 : vector<1x16x32xf32>
    %c0_14 = arith.constant 0 : index
    %c0_15 = arith.constant 0 : index
    %c0_16 = arith.constant 0 : index
    %22 = vector.load %arg7[%c0_14, %c0_15, %c0_16] : memref<1x16x32xf32, #tpu.memory_space<vmem>>, vector<1x16x32xf32>
    tpu.vector_store %arg7[%c0_14, %c0_15, %c0_16], %21 {strides = array<i32>} : memref<1x16x32xf32, #tpu.memory_space<vmem>>, vector<1x16x32xf32>,
    return
  }
  func.func @transform_0(%arg0: i32) -> (i32, i32) {
    %c0_i32 = arith.constant 0 : i32
    %c0_i32_0 = arith.constant 0 : i32
    %c0_i32_1 = arith.constant 0 : i32
    return %c0_i32, %c0_i32_0 : i32, i32
  }
  func.func @transform_1(%arg0: i32) -> (i32, i32) {
    %c0_i32 = arith.constant 0 : i32
    %c0_i32_0 = arith.constant 0 : i32
    %c0_i32_1 = arith.constant 0 : i32
    return %c0_i32, %c0_i32_0 : i32, i32
  }
  func.func @transform_2(%arg0: i32) -> (i32, i32, i32) {
    %c0_i32 = arith.constant 0 : i32
    %c0_i32_0 = arith.constant 0 : i32
    %c0_i32_1 = arith.constant 0 : i32
    return %arg0, %c0_i32, %c0_i32_0 : i32, i32, i32
  }
  func.func @transform_3(%arg0: i32) -> (i32, i32) {
    %c0_i32 = arith.constant 0 : i32
    %c0_i32_0 = arith.constant 0 : i32
    %c0_i32_1 = arith.constant 0 : i32
    return %c0_i32, %c0_i32_0 : i32, i32
  }
  func.func @transform_4(%arg0: i32) -> (i32, i32) {
    %c0_i32 = arith.constant 0 : i32
    %c0_i32_0 = arith.constant 0 : i32
    %c0_i32_1 = arith.constant 0 : i32
    return %c0_i32, %c0_i32_0 : i32, i32
  }
  func.func @transform_5(%arg0: i32) -> (i32, i32) {
    %c0_i32 = arith.constant 0 : i32
    %c0_i32_0 = arith.constant 0 : i32
    %c0_i32_1 = arith.constant 0 : i32
    return %c0_i32, %c0_i32_0 : i32, i32
  }
  func.func @transform_6(%arg0: i32) -> (i32, i32, i32) {
    %c0_i32 = arith.constant 0 : i32
    %c0_i32_0 = arith.constant 0 : i32
    %c0_i32_1 = arith.constant 0 : i32
    return %arg0, %c0_i32, %c0_i32_0 : i32, i32, i32
  }
}

</mosaic_0001>

<bundles_post_ra>
// kernel: tpu_custom_call.1
= control target key start
LH: loop header
LB: loop body
LE: loop exit
PB: predicated region body
PF: predicated region fallthrough
CT: control target
= control target key end

     0   :  { %s1252_s0 = inlined_call_operand.hbm [shape: f32[16,16], index: 0, kind: input, shape index: {}]   ;;  %s1253_s1 = inlined_call_operand.hbm [shape: f32[16,32], index: 1, kind: input, shape index: {}]   ;;  %s1254_s2 = inlined_call_operand.hbm [shape: f32[2,16,32], index: 2, kind: input, shape index: {}]   ;;  %s1255_s3 = inlined_call_operand.hbm [shape: f32[32,32], index: 3, kind: input, shape index: {}]   ;;  %s1256_s4 = inlined_call_operand.hbm [shape: f32[32,32], index: 4, kind: input, shape index: {}]   ;;  %s1257_s5 = inlined_call_operand.vmem [shape: f32[1,32], index: 5, kind: input, shape index: {}]   ;;  %s1258_s6 = inlined_call_operand.hbm [shape: f32[2,16,32], index: 6, kind: output, shape index: {}]  }
   0x1   :  { %1261 = sst [smem:[#allocation18_spill]] %s1252_s0 }
   0x2   :  { %11 = vsyncpa [#allocation3], 0 }
   0x3   :  { %12 = vsyncpa [#allocation6], 0 }
   0x4   :  { %13 = vsyncpa [#allocation10], 0 }
   0x5   :  { %14 = vsyncpa [#allocation4], 0 }
   0x6   :  { %16 = vsyncpa [#allocation4 + $0x1], 0  ;;  %s1052_s21 = smov 0   ;;  %s1054_s22 = smov 0  }
   0x7   :  { %s1056_s23 = smov 0   ;;  %s1058_s24 = smov 0  }
   0x8 LB: > { %s1073_s25 = sadd.s32 4294967295, %s1007_s24   ;;  %s648_s26 = sadd.s32 4294967294, %s1007_s24   ;;  %s1007_s24 = sphi %s1058_s24, %s1275_s24   ;;  %s1003_s23 = sphi %s1056_s23, %s1274_s23   ;;  %s999_s22 = sphi %s1054_s22, %s1273_s22   ;;  %s995_s21 = sphi %s1052_s21, %s1272_s21  }
   0x9   : > { %p84_p0 = scmp.ne.s32.totalorder %s999_s22, %s995_s21  ;;  %p85_p1 = scmp.eq.s32.totalorder %s1073_s25, 0 }
   0xa   : > { %p171_p2 = scmp.eq.s32.totalorder %s1073_s25, 1  ;;  %p177_p3 = scmp.eq.s32.totalorder %s648_s26, 1 }
   0xb   : > { %p1082_p4 = por %p85_p1, %p84_p0  ;;  %p649_p5 = scmp.ge.s32.totalorder %s1007_s24, 1 }
   0xc   : > { %p1087_p6 = por %p177_p3, %p84_p0  ;;  %p184_p7 = scmp.lt.s32.totalorder %s1007_s24, 3 }
   0xd   : > { %s1264_s0 = sld [smem:[#allocation18_spill]]  ;;  %s1009_s9 = smov [#allocation2]  }
   0xe   : > { %p1095_p8 = pnand %p649_p5, %p184_p7  ;;  %s197_s10 = sshll.u32 %s1009_s9, 4  ;;  %s198_s10 = int_to_ptr.vmem [resolvable:$true] %s197_s10 }
   0xf   : > { %s209_s14 = sshll.u32 %s1253_s1, 4  ;;  %s1259_s15 = smov 128   ;;  %s210_s14 = int_to_ptr.hbm [resolvable:$true] %s209_s14 }
  0x10   : > { %p702_p9 = pneg %p1095_p8  ;;  %s1260_s16 = smov 8  }
  0x11   : > { %s1012_s17 = smov [#allocation5]   ;;  %s223_s26 = sshll.u32 %s1255_s3, 4  ;;  %s224_s26 = int_to_ptr.hbm [resolvable:$true] %s223_s26 }
  0x12   : > { %p1103_p10 = pnand %p702_p9, %p85_p1  ;;  %s211_s18 = sshll.u32 %s1012_s17, 4  ;;  %s212_s18 = int_to_ptr.vmem [resolvable:$true] %s211_s18 }
  0x13   : > { %s195_s7 = sshll.u32 %s1264_s0, 4  ;;  %s1013_s9 = smov [#allocation8]   ;;  %s196_s7 = int_to_ptr.hbm [resolvable:$true] %s195_s7 }
  0x14   : > { %705 = dma.hbm_to_vmem [thread:$0]  (!%p1103_p10), %s196_s7, 256, %s198_s10, [#allocation3], %s1259_s15, %s1259_s15, %s1260_s16  }
  0x15   : > { %708 = dma.hbm_to_vmem [thread:$0]  (!%p1103_p10), %s210_s14, 256, %s212_s18, [#allocation6], %s1259_s15, %s1259_s15, %s1260_s16  }
  0x16   : > { %s237_s7 = sshll.u32 %s1256_s4, 4  ;;  %s225_s10 = sshll.u32 %s1013_s9, 4  ;;  %s238_s7 = int_to_ptr.hbm [resolvable:$true] %s237_s7  ;;  %s226_s10 = int_to_ptr.vmem [resolvable:$true] %s225_s10 }
  0x17   : > { %711 = dma.hbm_to_vmem [thread:$0]  (!%p1103_p10), %s224_s26, 512, %s226_s10, [#allocation6], %s1259_s15, %s1259_s15, %s1260_s16  }
  0x18   : > { %s1014_s12 = smov [#allocation9]   ;;  %s1138_s14 = sadd.s32 1, %s1007_s24  }
  0x19   : > { %s239_s13 = sshll.u32 %s1014_s12, 4  ;;  %s71_s17 = sadd.s32 1, %s1003_s23  ;;  %s240_s13 = int_to_ptr.vmem [resolvable:$true] %s239_s13 }
  0x1a   : > { %714 = dma.hbm_to_vmem [thread:$0]  (!%p1103_p10), %s238_s7, 512, %s240_s13, [#allocation10], %s1259_s15, %s1259_s15, %s1260_s16  }
  0x1b   : > { %s68_s18 = ssub.s32 %s1007_s24, %s1138_s14  ;;  %p78_p12 = scmp.ne.s32.totalorder %s1003_s23, %s999_s22 }
  0x1c   : > { %p69_p13 = scmp.eq.s32.totalorder %s68_s18, 0  ;;  %p79_p0 = scmp.eq.s32.totalorder %s1007_s24, 0 }
  0x1d   : > { %p1148_p3 = por %p171_p2, %p78_p12  ;;  %p727_p7 = scmp.lt.s32.totalorder %s1007_s24, 2 }
  0x1e   : > { %s1153_s20 = scalar_select %p69_p13, %s1003_s23, %s71_s17  }
  0x1f   : > { %p80_p5 = por %p79_p0, %p78_p12  ;;  %s256_s11 = sand.u32 1, %s1007_s24  }
  0x20   : > { %s258_s26 = sand.u32 1, %s1003_s23   ;;  %s678_s30 = sshll.u32 %s1007_s24, 4 }
  0x21   : > { %s655_s29 = sshll.u32 %s258_s26, 4  ;;  %s265_s10 = scalar_lea.hbm %s1254_s2, %s678_s30 }
  0x22   : > { %s266_s12 = sshll.u32 %s265_s10, 4  ;;  %s260_s13 = scalar_lea.vmem [#allocation7], %s655_s29  ;;  %s267_s12 = int_to_ptr.hbm [resolvable:$true] %s266_s12 }
  0x23   : > { %s268_s18 = sshll.u32 %s260_s13, 4  ;;  %p1162_p2 = pnand %p727_p7, %p80_p5  ;;  %s269_s18 = int_to_ptr.vmem [resolvable:$true] %s268_s18 }
  0x24   : > { %s257_s17 = scalar_lea.sflag [#allocation3], %s256_s11  ;;  %s895_s16 = sshra.s32 %s267_s12, 4  ;;  %s896_s16 = int_to_ptr.hbm [resolvable:$true] %s895_s16 }
  0x25   : > { %s897_s0 = scalar_lea.hbm %s896_s16, 16  ;;  %p899_p10 = pneg %p1162_p2 }
  0x26   : > { %p898_p9 = scmp.ne.s32.totalorder %s896_s16, %s897_s0  ;;  %s902_s29 = scalar_lea.hbm %s1254_s2, 32 }
  0x27   : > { %p903_p0 = scmp.lt.s32.totalorder %s896_s16, %s1254_s2  ;;  %p904_p5 = scmp.lt.s32.totalorder %s902_s29, %s897_s0 }
  0x28   : > { %p900_p12 = pnand %p899_p10, %p898_p9 }
  0x29   : > { %p905_p7 = por %p904_p5, %p903_p0 }
  0x2a   : > { %p901_p13 = pneg %p900_p12 }
  0x2c   : > { %p906_p11 = pnand %p905_p7, %p901_p13 }
  0x2e   : > { %909 = shalt.err (!%p906_p11)
}
  0x2f   : > { %s1269_s11 = smov 8   ;;  %s1270_s10 = smov 128  }
  0x30   : > { %718 = dma.hbm_to_vmem [thread:$0]  (!%p1162_p2), %s267_s12, 256, %s269_s18, %s257_s17, %s1270_s10, %s1270_s10, %s1269_s11  }
  0x31   : > { %280 = sbr.rel (%p1095_p8) target bundleno = 677 (0x2a5), region = 44 }
  0x36   : > { %970 = dma.done.wait (%p85_p1), [#allocation3], 256  }
  0x37   : > { %972 = vsyncadd (%p85_p1), [#allocation3], 4294967040 }
  0x38   : > { %974 = dma.done.wait (%p85_p1), [#allocation6], 256  }
  0x39   : > { %976 = vsyncadd (%p85_p1), [#allocation6], 4294967040  ;;  %s292_s0 = sand.u32 1, %s1073_s25   ;;  %s294_s15 = sand.u32 1, %s999_s22  }
  0x3a   : > { %s1193_s8 = sshll.u32 %s294_s15, 4  ;;  %s293_s16 = scalar_lea.sflag [#allocation3], %s292_s0 }
  0x3b   : > { %s296_s12 = scalar_lea.vmem [#allocation7], %s1193_s8 }
  0x3c   : > { %978 = dma.done.wait (%p1082_p4), %s293_s16, 256  }
  0x3d   : > { %980 = vsyncadd (%p1082_p4), %s293_s16, 4294967040 }
  0x3e   : > { %982 = dma.done.wait (%p85_p1), [#allocation6], 512  }
  0x3f   : > { %984 = vsyncadd (%p85_p1), [#allocation6], 4294966784 }
  0x40   : > { %986 = dma.done.wait (%p85_p1), [#allocation10], 512  }
  0x41   : > { %988 = vsyncadd (%p85_p1), [#allocation10], 4294966784  ;;  %v379_v0 = vld [vmem:[#allocation9 + $0x18] sm:$0xff]  ;;  %v378_v1 = vld [vmem:[#allocation9 + $0x10] sm:$0xff]  ;;  %vm342_vm0 = vcmask 261120   ;;  %vm437_vm1 = vcmask 130048  }
  0x42   : > { %392 = vmatpush.msra.mxu1 %v379_v0  ;;  %v377_v2 = vld [vmem:[#allocation9 + $0x8] sm:$0xff]  ;;  %v376_v3 = vld [vmem:[#allocation9] sm:$0xff]  ;;  %v341_v14 = vld [vmem:[#allocation8 + $0x18] sm:$0xff]  ;;  %s679_s18 = sshll.u32 %s1073_s25, 4  ;;  %s335_s29 = scalar_lea.vmem [#allocation11], %s1193_s8 }
  0x43   : > { %v336_v4 = vld [vmem:[%s296_s12] sm:$0xff]  ;;  %v337_v5 = vld [vmem:[%s296_s12 + $0x8] sm:$0xff]  ;;  %361 = vmatpush.msra.mxu0 %v341_v14  ;;  %s533_s30 = scalar_lea.hbm %s1258_s6, %s679_s18  ;;  %s534_s7 = sshll.u32 %s335_s29, 4  ;;  %s535_s7 = int_to_ptr.vmem [resolvable:$true] %s534_s7 }
  0x44   : > { %393 = vmatpush.msra.mxu1 %v378_v1  ;;  %v436_v6 = vld [vmem:[#allocation2 + $0x8] sm:$0xff]  ;;  %v435_v7 = vld [vmem:[#allocation2] sm:$0xff]  ;;  %v340_v15 = vld [vmem:[#allocation8 + $0x10] sm:$0xff]  ;;  %s536_s9 = sshll.u32 %s533_s30, 4  ;;  %s522_s25 = scalar_lea.sflag [#allocation4], %s294_s15  ;;  %s537_s9 = int_to_ptr.hbm [resolvable:$true] %s536_s9 }
  0x45   : > { %464 = vmatpush.msra.mxu2 %v436_v6  ;;  %680 = vmatpush.msra.mxu3 %v436_v6  ;;  %v339_v16 = vld [vmem:[#allocation8 + $0x8] sm:$0xff]  ;;  %v338_v17 = vld [vmem:[#allocation8] sm:$0xff]  ;;  %v372_v23 = vld [vmem:[#allocation5] sm:$0xff]  ;;  %s939_s11 = sshra.s32 %s537_s9, 4  ;;  %s945_s16 = scalar_lea.hbm %s1258_s6, 32  ;;  %s940_s11 = int_to_ptr.hbm [resolvable:$true] %s939_s11 }
  0x46   : > { %394 = vmatpush.msra.mxu1 %v377_v2  ;;  %362 = vmatpush.msra.mxu0 %v340_v15  ;;  %v774_v25 = vld [vmem:[%s1257_s5] ss:$0 sm:$0xff]  ;;  %v373_v29 = vld [vmem:[#allocation5 + $0x8] sm:$0xff]  ;;  %s941_s10 = scalar_lea.hbm %s940_s11, 16  ;;  %p946_p11 = scmp.lt.s32.totalorder %s940_s11, %s1258_s6 }
  0x47   : > { %465 = vmatpush.msra.mxu2 %v435_v7  ;;  %681 = vmatpush.msra.mxu3 %v435_v7  ;;  %p942_p1 = scmp.ne.s32.totalorder %s940_s11, %s941_s10  ;;  %p947_p2 = scmp.lt.s32.totalorder %s945_s16, %s941_s10 }
  0x48   : > { %395 = vmatpush.msra.mxu1 %v376_v3  ;;  %363 = vmatpush.msra.mxu0 %v339_v16 }
  0x49   : > { %667 = vmatmul.msk.f32.vlgmr.msra.gmra.mxu1 %vm342_vm0, %v336_v4  ;;  %p943_p4 = pnand %p942_p1, %p1148_p3  ;;  %p948_p9 = por %p947_p2, %p946_p11 }
  0x4a   : > { %364 = vmatpush.msra.mxu0 %v338_v17 }
  0x4b   : > { %665 = vmatmul.msk.f32.vlgmr.msra.gmra.mxu0 %vm342_vm0, %v336_v4  ;;  %p944_p8 = pneg %p943_p4 }
  0x4d   : > { %p949_p10 = pnand %p948_p9, %p944_p8 }
  0x51   : > { %668 = vmatmul.msk.f32.gmra.mxu1 %vm342_vm0, %v337_v5 }
  0x53   : > { %666 = vmatmul.msk.f32.gmra.mxu0 %vm342_vm0, %v337_v5 }
  0xc6   : > { %v397_v8 = vpop.f32.mrf.mxu1 }
  0xc7   : > { %403 = vxpose.xlu0.b32.start [1/2] (short) (narrow) %v397_v8, 32 }
  0xc8   : > { %v366_v22 = vpop.f32.mrf.mxu0 }
  0xc9   : > { %v374_v24 = vmul.f32 %v372_v23, %v366_v22 }
  0xce   : > { %v400_v9 = vpop.f32.mrf.mxu1 }
  0xcf   : > { %404 = vxpose.xlu0.b32.end [2/2] (short) (narrow) %v400_v9, 32 }
  0xd0   : > { %v369_v28 = vpop.f32.mrf.mxu0 }
  0xd1   : > { %v375_v31 = vmul.f32 %v373_v29, %v369_v28 }
 0x16b   : > { %v419_v10 = vpop.trf.xlu0 }
 0x16c   : > { %669 = vmatmul.msk.f32.vlgmr.msra.gmra.mxu2 %vm437_vm1, %v419_v10 }
 0x173   : > { %v420_v11 = vpop.trf.xlu0 }
 0x174   : > { %670 = vmatmul.msk.f32.vlgmr.msra.gmra.mxu3 %vm437_vm1, %v420_v11 }
 0x17b   : > { %v421_v12 = vpop.trf.xlu0 }
 0x17c   : > { %671 = vmatmul.msk.f32.gmra.mxu3 %vm437_vm1, %v421_v12 }
 0x183   : > { %v422_v13 = vpop.trf.xlu0 }
 0x184   : > { %672 = vmatmul.msk.f32.gmra.mxu3 %vm437_vm1, %v422_v13 }
 0x1ef   : > { %v467_v18 = vpop.f32.mrf.mxu2 }
 0x1f0   : > { %479 = vxpose.xlu1.b32.start [1/4] (short) (narrow) %v467_v18, 16 }
 0x1f7   : > { %v470_v19 = vpop.f32.mrf.mxu3 }
 0x1f8   : > { %480 = vxpose.xlu1.b32.cont [2/4] (short) (narrow) %v470_v19, 16 }
 0x1ff   : > { %v473_v20 = vpop.f32.mrf.mxu3 }
 0x200   : > { %481 = vxpose.xlu1.b32.cont [3/4] (short) (narrow) %v473_v20, 16 }
 0x207   : > { %v476_v21 = vpop.f32.mrf.mxu3 }
 0x208   : > { %482 = vxpose.xlu1.b32.end [4/4] (short) (narrow) %v476_v21, 16 }
 0x294   : > { %v495_v26 = vpop.trf.xlu1 }
 0x295   : > { %v511_v27 = vadd.f32 %v495_v26, %v374_v24 }
 0x297   : > { %v517_v30 = vadd.f32 %v774_v25, %v511_v27 }
 0x299   : > { %519 = vst.msk [vmem:[%s335_s29] sm:$0xff] %vm342_vm0, %v517_v30 }
 0x29c   : > { %v496_v32 = vpop.trf.xlu1 }
 0x29d   : > { %v512_v33 = vadd.f32 %v496_v32, %v375_v31 }
 0x29f   : > { %v518_v34 = vadd.f32 %v774_v25, %v512_v33 }
 0x2a1   : > { %520 = vst.msk [vmem:[%s335_s29 + $0x8] sm:$0xff] %vm342_vm0, %v518_v34 }
 0x2a2   : > { %952 = shalt.err (!%p949_p10)
}
 0x2a3   : > { %s1015_s15 = smov 128   ;;  %s1016_s13 = smov 8  }
 0x2a4   : > { %700 = dma.vmem_to_hbm [thread:$0]  (%p1148_p3), %s535_s7, 256, %s537_s9, %s522_s25, %s1015_s15, %s1015_s15, %s1016_s13  }
 0x2a5 PF: > { %s551_s18 = sand.u32 1, %s995_s21   ;;  %p1271_p12 = scmp.ge.s32.totalorder %s1007_s24, 2 }
 0x2a6   : > { %s552_s17 = scalar_lea.sflag [#allocation4], %s551_s18 }
 0x2a7   : > { %p720_p13 = pnand %p1271_p12, %p1087_p6 }
 0x2a9   : > { %p721_p0 = pneg %p720_p13 }
 0x2ab   : > { %990 = dma.done.wait (%p721_p0), %s552_s17, 256  }
 0x2ac   : > { %992 = vsyncadd (%p721_p0), %s552_s17, 4294967040  ;;  %p19_p5 = scmp.ge.s32.totalorder %s1138_s14, 4   ;;  %s1272_s21 = smov %s999_s22 }
 0x2ad   : > { %s1273_s22 = smov %s1003_s23  ;;  %s1274_s23 = smov %s1153_s20 }
 0x2ae   : > { %s1275_s24 = smov %s1138_s14  ;;  %21 = sbr.rel (!%p19_p5) target bundleno = 8 (0x8), region = 104 }
 0x2b3   :  { %558 = vsyncpa [#allocation3], 1 }
 0x2b4   :  { %560 = vsyncpa [#allocation3 + $0x1], 1 }
 0x2b5   :  { %561 = vsyncpa [#allocation6], 1 }
 0x2b6   :  { %562 = vsyncpa [#allocation10], 1 }
 0x2b7   :  { %563 = vsyncpa [#allocation4], 1 }
 0x2b8   :  { %565 = vsyncpa [#allocation4 + $0x1], 1 }

</bundles_post_ra>
